<compile_context>
chip_gen: v7x
topology: tpu7x:2x2x1
jax: 0.10.0
libtpu: 0.0.40
codegen_flags: <defaults>
</compile_context>

<pallas_src>
import jax
import jax.numpy as jnp
from jax.experimental import pallas as pl
from jax.experimental.pallas import tpu as pltpu


# Rows (sublanes) of 128-lane data processed per grid step.
# 4096 * 128 * 4 B = 2 MiB per f32 input buffer (1 MiB for bf16).
_TILE_ROWS = 4096


def _partial_sum_kernel(x_ref, out_ref):
    """Reduce one (tile_rows, 128) block to a lane-dense (1, 1, 128) partial sum."""
    x = x_ref[...].astype(jnp.float32)  # widen (bf16-friendly) before accumulation
    out_ref[0, :, :] = jnp.sum(x, axis=0, keepdims=True)


def separation_cost(incorrect_class_prototype_activations):
    """JAX/Pallas equivalent of SeparationCost.forward (mean over all elements)."""
    if incorrect_class_prototype_activations is None:
        raise ValueError(
            "Incorrect class prototype activations must be provided to calculate "
            "separation cost")

    x = incorrect_class_prototype_activations
    n = x.size
    flat = x.reshape(-1)

    rows = -(-n // 128)                      # ceil(n / 128) lane-major rows
    tile_rows = min(_TILE_ROWS, rows)        # full-dim block when the array is small
    chunk = tile_rows * 128
    n_pad = -(-n // chunk) * chunk
    if n_pad != n:
        # Zero padding touches at most one tile's worth of tail elements; the
        # padded zeros contribute nothing to the sum, and we divide by the true n.
        flat = jnp.pad(flat, (0, n_pad - n))
    x2d = flat.reshape(n_pad // 128, 128)
    num_tiles = (n_pad // 128) // tile_rows

    partials = pl.pallas_call(
        _partial_sum_kernel,
        out_shape=jax.ShapeDtypeStruct((num_tiles, 1, 128), jnp.float32),
        grid_spec=pltpu.PrefetchScalarGridSpec(
            num_scalar_prefetch=0,
            grid=(num_tiles,),
            in_specs=[pl.BlockSpec((tile_rows, 128), lambda i: (i, 0))],
            out_specs=pl.BlockSpec((1, 1, 128), lambda i: (i, 0, 0)),
        ),
        compiler_params=pltpu.CompilerParams(
            dimension_semantics=("parallel",),
            vmem_limit_bytes=32 * 1024 * 1024),
    )(x2d)

    total = jnp.sum(partials, dtype=jnp.float32)
    mean = total / jnp.float32(n)
    if jnp.issubdtype(x.dtype, jnp.floating):
        mean = mean.astype(x.dtype)
    return mean


if __name__ == "__main__":
    key = jax.random.PRNGKey(0)
    k1, k2 = jax.random.split(key)

    # Shape consistent with the module: per-sample incorrect-class prototype
    # activations, e.g. batch=8, (num_prototypes - prototypes_per_class)=192.
    acts = jax.random.normal(k1, (8, 192), dtype=jnp.float32)
    out = jax.block_until_ready(separation_cost(acts))
    ref = jnp.mean(acts)
    assert jnp.allclose(out, ref, rtol=1e-5, atol=1e-5), (out, ref)

    # Odd, non-128-aligned total size exercises the zero-pad + true-count divide.
    acts2 = jax.random.normal(k2, (3, 7, 11), dtype=jnp.float32)
    out2 = jax.block_until_ready(separation_cost(acts2))
    ref2 = jnp.mean(acts2)
    assert jnp.allclose(out2, ref2, rtol=1e-5, atol=1e-5), (out2, ref2)

    print("KERNEL_OK")
</pallas_src>

<mosaic_0001>
module attributes {stable_mosaic.version = 11 : i64} {
  func.func @_partial_sum_kernel(%arg0: i32, %arg1: memref<12x128xf32, #tpu.memory_space<vmem>>, %arg2: memref<1x1x128xf32, #tpu.memory_space<vmem>>) attributes {dimension_semantics = [#tpu.dimension_semantics<parallel>], iteration_bounds = array<i64: 1>, scalar_prefetch = 0 : i64, scratch_operands = 0 : i64, tpu.core_type = #tpu.core_type<tc>, window_params = [{transform_indices = @transform_0, window_bounds = array<i64: 12, 128>}, {transform_indices = @transform_1, window_bounds = array<i64: 1, 1, 128>}]} {
    %c0 = arith.constant 0 : index
    %c0_0 = arith.constant 0 : index
    %0 = vector.load %arg1[%c0, %c0_0] : memref<12x128xf32, #tpu.memory_space<vmem>>, vector<12x128xf32>
    %cst = arith.constant dense<0.000000e+00> : vector<128xf32>
    %1 = vector.multi_reduction <add>, %0, %cst [0] : vector<12x128xf32> to vector<128xf32>
    %2 = vector.shape_cast %1 : vector<128xf32> to vector<1x128xf32>
    %c0_1 = arith.constant 0 : index
    %c0_2 = arith.constant 0 : index
    %c0_3 = arith.constant 0 : index
    %3 = vector.load %arg2[%c0_1, %c0_2, %c0_3] : memref<1x1x128xf32, #tpu.memory_space<vmem>>, vector<1x1x128xf32>
    %4 = vector.shape_cast %3 : vector<1x1x128xf32> to vector<1x128xf32>
    %5 = vector.shape_cast %2 : vector<1x128xf32> to vector<1x1x128xf32>
    tpu.vector_store %arg2[%c0_1, %c0_2, %c0_3], %5 {strides = array<i32>} : memref<1x1x128xf32, #tpu.memory_space<vmem>>, vector<1x1x128xf32>,
    return
  }
  func.func @transform_0(%arg0: i32) -> (i32, i32) {
    %c0_i32 = arith.constant 0 : i32
    %c0_i32_0 = arith.constant 0 : i32
    return %arg0, %c0_i32 : i32, i32
  }
  func.func @transform_1(%arg0: i32) -> (i32, i32, i32) {
    %c0_i32 = arith.constant 0 : i32
    %c0_i32_0 = arith.constant 0 : i32
    %c0_i32_1 = arith.constant 0 : i32
    return %arg0, %c0_i32, %c0_i32_0 : i32, i32, i32
  }
}

</mosaic_0001>

<bundles_post_ra>
// kernel: tpu_custom_call.1
= control target key start
LH: loop header
LB: loop body
LE: loop exit
PB: predicated region body
PF: predicated region fallthrough
CT: control target
= control target key end

     0   :  { %6 = vsyncpa [#allocation3], 0  ;;  %s140_s0 = inlined_call_operand.hbm [shape: f32[12,128], index: 0, kind: input, shape index: {}]   ;;  %s141_s1 = inlined_call_operand.hbm [shape: f32[1,1,128], index: 1, kind: output, shape index: {}]  }
   0x1   :  { %7 = vsyncpa [#allocation4], 0  ;;  %s102_s6 = smov [#allocation2]   ;;  %s54_s10 = scalar_lea.hbm %s140_s0, 256 }
   0x2   :  { %s13_s7 = sshll.u32 %s102_s6, 4  ;;  %p55_p0 = scmp.ne.s32.totalorder %s140_s0, %s54_s10  ;;  %s14_s7 = int_to_ptr.vmem [resolvable:$true] %s13_s7 }
   0x3   :  { %p58_p1 = scmp.lt.u32.totalorder %s54_s10, %s140_s0 }
   0x5   :  { %p60_p2 = pnand %p58_p1, %p55_p0 }
   0x7   :  { %63 = shalt.err (!%p60_p2)
}
   0x8   :  { %s64_s15 = scalar_lea.vmem %s14_s7, 256  ;;  %p69_p4 = scmp.lt.s32.totalorder %s14_s7, %s14_s7 }
   0x9   :  { %p65_p3 = scmp.ne.s32.totalorder %s14_s7, %s64_s15  ;;  %p70_p5 = scmp.lt.s32.totalorder %s64_s15, %s64_s15 }
   0xb   :  { %p71_p6 = por %p70_p5, %p69_p4 }
   0xd   :  { %p72_p7 = pnand %p71_p6, %p65_p3 }
   0xf   :  { %75 = shalt.err (!%p72_p7)
}
  0x10   :  { %s103_s16 = smov 128   ;;  %s104_s17 = smov 8  }
  0x11   :  { %19 = dma.hbm_to_vmem [thread:$0]  %s140_s0, 256, %s14_s7, [#allocation3], %s103_s16, %s103_s16, %s104_s17  }
  0x12   :  { %98 = dma.done.wait [#allocation3], 256  }
  0x13   :  { %99 = vsyncadd [#allocation3], 4294967040  ;;  %vm25_vm0 = vcmask 1043456   ;;  %v23_v0 = vld [vmem:[#allocation2] sm:$0xff]  ;;  %v24_v1 = vld [vmem:[#allocation2 + $0x8] sm:$0xf] }
  0x14   :  { %v26_v2 = vsel %vm25_vm0, %v24_v1, 0.0  ;;  %s105_s20 = smov [#allocation5]  }
  0x15   :  { %v27_v3 = vadd.f32 %v26_v2, %v23_v0  ;;  %s41_s21 = sshll.u32 %s105_s20, 4  ;;  %s42_s21 = int_to_ptr.vmem [resolvable:$true] %s41_s21 }
  0x16   :  { %s76_s22 = scalar_lea.vmem %s42_s21, 16  ;;  %s80_s0 = scalar_lea.vmem %s42_s21, 32 }
  0x17   :  { %v28_v4 = vrot.slane %v27_v3, 4  ;;  %p77_p8 = scmp.ne.s32.totalorder %s42_s21, %s76_s22  ;;  %p81_p9 = scmp.lt.s32.totalorder %s42_s21, %s42_s21 }
  0x18   :  { %p82_p10 = scmp.lt.s32.totalorder %s80_s0, %s76_s22 }
  0x19   :  { %v29_v5 = vadd.f32 %v28_v4, %v27_v3 }
  0x1a   :  { %p83_p11 = por %p82_p10, %p81_p9 }
  0x1b   :  { %v30_v6 = vrot.slane %v29_v5, 2 }
  0x1c   :  { %p84_p12 = pnand %p83_p11, %p77_p8 }
  0x1d   :  { %v31_v7 = vadd.f32 %v30_v6, %v29_v5 }
  0x1f   :  { %v32_v8 = vrot.slane %v31_v7, 1 }
  0x21   :  { %v33_v9 = vadd.f32 %v32_v8, %v31_v7 }
  0x23   :  { %34 = vst [vmem:[#allocation5] sm:$0x1] %v33_v9 }
  0x24   :  { %87 = shalt.err (!%p84_p12)
}
  0x25   :  { %s88_s25 = scalar_lea.hbm %s141_s1, 16 }
  0x26   :  { %p89_p13 = scmp.ne.s32.totalorder %s141_s1, %s88_s25  ;;  %p92_p0 = scmp.lt.u32.totalorder %s88_s25, %s141_s1 }
  0x28   :  { %p94_p1 = pnand %p92_p0, %p89_p13 }
  0x2a   :  { %97 = shalt.err (!%p94_p1)
}
  0x2b   :  { %44 = dma.vmem_to_hbm [thread:$0]  %s42_s21, 16, %s141_s1, [#allocation4]  }
  0x2c   :  { %100 = dma.done.wait [#allocation4], 16  }
  0x2d   :  { %101 = vsyncadd [#allocation4], 4294967280 }
  0x2e   :  { %48 = vsyncpa [#allocation3], 1 }
  0x2f   :  { %49 = vsyncpa [#allocation4], 1 }

</bundles_post_ra>
